<compile_context>
chip_gen: v7x
topology: tpu7x:2x2x1
jax: 0.10.0
libtpu: 0.0.40
codegen_flags: <defaults>
</compile_context>

<pallas_src>
import math
from functools import partial

import jax
import jax.numpy as jnp
from jax.experimental import pallas as pl
from jax.experimental.pallas import tpu as pltpu

OUT_PAD = 128  # lane-dense fused-head width: [action probs | value | zero pad]


def _round_up(x, m):
    return (x + m - 1) // m * m


def actor_critic_kernel(x_ref, w1_ref, b1_ref, w2_ref, b2_ref, wh_ref, bh_ref,
                        out_ref, *, num_actions):
    """One batch tile: shared MLP -> fused actor+critic head -> masked softmax.

    Matmuls run in bf16 on the MXU with f32 accumulation; softmax and the
    critic value stay in f32 (v5e VPU/EUP have no bf16).  Output block is
    (TB, 128): lanes [0, A) hold softmax probabilities, lane A holds the
    critic value, remaining lanes are zero.
    """
    x = x_ref[...].astype(jnp.bfloat16)

    # shared layer 1: Linear -> ReLU (-> Dropout = identity)
    h = jnp.dot(x, w1_ref[...], preferred_element_type=jnp.float32) + b1_ref[...]
    h = jnp.maximum(h, 0.0)

    # shared layer 2: Linear -> ReLU (-> Dropout = identity)
    h = jnp.dot(h.astype(jnp.bfloat16), w2_ref[...],
                preferred_element_type=jnp.float32) + b2_ref[...]
    h = jnp.maximum(h, 0.0)

    # fused actor + critic head: one lane-padded MXU pass
    fused = jnp.dot(h.astype(jnp.bfloat16), wh_ref[...],
                    preferred_element_type=jnp.float32) + bh_ref[...]

    lane = jax.lax.broadcasted_iota(jnp.int32, fused.shape, 1)
    actor_mask = lane < num_actions

    # numerically-stable softmax restricted to the first `num_actions` lanes
    m = jnp.max(jnp.where(actor_mask, fused, -jnp.inf), axis=-1, keepdims=True)
    shifted = jnp.minimum(fused - m, 0.0)          # clamp pad/value lanes too
    e = jnp.where(actor_mask, jnp.exp(shifted), 0.0)
    denom = jnp.sum(e, axis=-1, keepdims=True)
    # exact reciprocal (EUP slot, off the VALU path); approx=True drifts ~1e-3
    probs = e * pl.reciprocal(denom, approx=False)

    # single lane-dense write: [probs | value | 0...]
    out_ref[...] = jnp.where(
        actor_mask, probs, jnp.where(lane == num_actions, fused, 0.0))


def pack_params(params):
    """One-time parameter packing (hoisted out of the per-step forward).

    Fuses the actor [H, A] and critic [H, 1] heads into a single lane-padded
    [H, 128] weight/bias, and casts the matmul weights to bf16 (biases stay
    f32; accumulation in the kernel is f32).
    """
    H = params["w1"].shape[1]
    A = params["wa"].shape[1]
    assert A + 1 <= OUT_PAD, "action_size + 1 must fit in the 128-lane output"

    w_head = jnp.zeros((H, OUT_PAD), jnp.float32)
    w_head = w_head.at[:, :A].set(params["wa"]).at[:, A:A + 1].set(params["wc"])
    b_head = jnp.zeros((1, OUT_PAD), jnp.float32)
    b_head = b_head.at[:, :A].set(params["ba"]).at[:, A:A + 1].set(params["bc"])

    return {
        "w1": params["w1"].astype(jnp.bfloat16), "b1": params["b1"],
        "w2": params["w2"].astype(jnp.bfloat16), "b2": params["b2"],
        "wh": w_head.astype(jnp.bfloat16),       "bh": b_head,
        "num_actions": A,
    }


def actor_critic_forward(state, packed, *, block_b=2048):
    """Batch-tiled pallas_call; weights stay VMEM-resident (single-buffered)."""
    B, S = state.shape
    H = packed["w1"].shape[1]
    A = packed["num_actions"]

    # Batch tile: as large as block_b allows, but split so the grid has >=2
    # steps when the batch permits -> v7x's two TensorCores both get work via
    # dimension_semantics=("parallel",).  No-op on v5e/v6e (1 TC).
    half = -(-B // 2)
    tb = max(8, min(block_b, _round_up(half, 8)))
    Bp = _round_up(B, tb)
    if Bp != B:
        state = jnp.pad(state, ((0, Bp - B), (0, 0)))
    grid = (Bp // tb,)

    # Constant index_map -> no refetch across the grid; one buffer is enough.
    def weight_spec(shape):
        return pl.BlockSpec(shape, lambda i: (0, 0),
                            pipeline_mode=pl.Buffered(1))

    # Explicit VMEM budget: 1x weights (bf16, single-buffered) +
    # 2x (state + output tiles, double-buffered) + headroom, clamped under
    # v7x's 64 MiB physical VMEM.
    weight_bytes = (S * H + H * H + H * OUT_PAD) * 2 + (2 * H + OUT_PAD) * 4
    tile_bytes = 2 * (tb * S * 4 + tb * OUT_PAD * 4)
    vmem_limit = int(1.5 * (weight_bytes + tile_bytes)) + (4 << 20)
    vmem_limit = max(16 << 20, min(vmem_limit, 60 << 20))

    flops = 2 * Bp * (S * H + H * H + H * OUT_PAD)
    bytes_accessed = (2 * (S * H + H * H + H * OUT_PAD)          # bf16 weights
                      + 4 * (2 * H + OUT_PAD)                    # f32 biases
                      + 4 * Bp * S + 4 * Bp * OUT_PAD)           # state + out
    cost = pl.CostEstimate(flops=flops, transcendentals=Bp * OUT_PAD,
                           bytes_accessed=bytes_accessed)

    out = pl.pallas_call(
        partial(actor_critic_kernel, num_actions=A),
        out_shape=jax.ShapeDtypeStruct((Bp, OUT_PAD), jnp.float32),
        grid=grid,
        in_specs=[
            pl.BlockSpec((tb, S), lambda i: (i, 0)),              # state tile
            weight_spec((S, H)), weight_spec((1, H)),             # shared layer 1
            weight_spec((H, H)), weight_spec((1, H)),             # shared layer 2
            weight_spec((H, OUT_PAD)), weight_spec((1, OUT_PAD)), # fused head
        ],
        out_specs=pl.BlockSpec((tb, OUT_PAD), lambda i: (i, 0)),
        compiler_params=pltpu.CompilerParams(
            dimension_semantics=("parallel",),
            vmem_limit_bytes=vmem_limit),
        cost_estimate=cost,
    )(state, packed["w1"], packed["b1"], packed["w2"], packed["b2"],
      packed["wh"], packed["bh"])

    # NOTE: if the consumer can take the packed (B, 128) [probs|value|pad]
    # block directly, fold these slices into the consumer to skip an extra
    # HBM pass over the output.
    probs = out[:B, :A]
    value = out[:B, A:A + 1]
    return probs, value


def xavier_uniform(key, fan_in, fan_out):
    """Matches torch.nn.init.xavier_uniform_ (gain=1); stored as [in, out]."""
    bound = math.sqrt(6.0 / (fan_in + fan_out))
    return jax.random.uniform(
        key, (fan_in, fan_out), dtype=jnp.float32, minval=-bound, maxval=bound)


def init_params(key, state_size, action_size, hidden_size):
    k1, k2, k3, k4 = jax.random.split(key, 4)
    bias = lambda n: jnp.full((1, n), 0.01, dtype=jnp.float32)
    return {
        "w1": xavier_uniform(k1, state_size, hidden_size), "b1": bias(hidden_size),
        "w2": xavier_uniform(k2, hidden_size, hidden_size), "b2": bias(hidden_size),
        "wa": xavier_uniform(k3, hidden_size, action_size), "ba": bias(action_size),
        "wc": xavier_uniform(k4, hidden_size, 1),           "bc": bias(1),
    }


def reference_forward(state, p):
    """Plain-JAX f32 reference (eval-mode dropout)."""
    h = jnp.maximum(state @ p["w1"] + p["b1"], 0.0)
    h = jnp.maximum(h @ p["w2"] + p["b2"], 0.0)
    logits = h @ p["wa"] + p["ba"]
    probs = jax.nn.softmax(logits, axis=-1)
    value = h @ p["wc"] + p["bc"]
    return probs, value


if __name__ == "__main__":
    # Small, module-consistent shapes: batch=2, state=16, hidden=128 (module
    # default, keeps all matmuls full lane width), actions=4.
    B, STATE, HIDDEN, ACTIONS = 2, 16, 128, 4

    key = jax.random.PRNGKey(0)
    k_state, k_params = jax.random.split(key)

    state = jax.random.normal(k_state, (B, STATE), dtype=jnp.float32)
    params = init_params(k_params, STATE, ACTIONS, HIDDEN)
    packed = pack_params(params)   # one-time; reused across forward calls

    probs, value = actor_critic_forward(state, packed)
    probs = jax.block_until_ready(probs)
    value = jax.block_until_ready(value)

    # sanity check against pure-JAX f32 reference (bf16 matmuls -> ~1e-2 tol)
    ref_probs, ref_value = reference_forward(state, params)
    assert probs.shape == (B, ACTIONS) and value.shape == (B, 1)
    assert jnp.allclose(probs, ref_probs, atol=2e-2, rtol=2e-2)
    assert jnp.allclose(value, ref_value, atol=2e-2, rtol=2e-2)
    assert jnp.allclose(jnp.sum(probs, axis=-1), 1.0, atol=1e-3)

    print("KERNEL_OK")
</pallas_src>

<mosaic_0001>
module attributes {stable_mosaic.version = 11 : i64} {
  func.func @actor_critic_kernel(%arg0: i32, %arg1: memref<8x16xf32, #tpu.memory_space<vmem>>, %arg2: memref<16x128xbf16, #tpu.memory_space<vmem>>, %arg3: memref<1x128xf32, #tpu.memory_space<vmem>>, %arg4: memref<128x128xbf16, #tpu.memory_space<vmem>>, %arg5: memref<1x128xf32, #tpu.memory_space<vmem>>, %arg6: memref<128x128xbf16, #tpu.memory_space<vmem>>, %arg7: memref<1x128xf32, #tpu.memory_space<vmem>>, %arg8: memref<8x128xf32, #tpu.memory_space<vmem>>) attributes {dimension_semantics = [#tpu.dimension_semantics<parallel>], iteration_bounds = array<i64: 1>, scalar_prefetch = 0 : i64, scratch_operands = 0 : i64, tpu.core_type = #tpu.core_type<tc>, window_params = [{transform_indices = @transform_0, window_bounds = array<i64: 8, 16>}, {pipeline_mode = #tpu.pipeline_mode<synchronous>, transform_indices = @transform_1, window_bounds = array<i64: 16, 128>}, {pipeline_mode = #tpu.pipeline_mode<synchronous>, transform_indices = @transform_2, window_bounds = array<i64: 1, 128>}, {pipeline_mode = #tpu.pipeline_mode<synchronous>, transform_indices = @transform_3, window_bounds = array<i64: 128, 128>}, {pipeline_mode = #tpu.pipeline_mode<synchronous>, transform_indices = @transform_4, window_bounds = array<i64: 1, 128>}, {pipeline_mode = #tpu.pipeline_mode<synchronous>, transform_indices = @transform_5, window_bounds = array<i64: 128, 128>}, {pipeline_mode = #tpu.pipeline_mode<synchronous>, transform_indices = @transform_6, window_bounds = array<i64: 1, 128>}, {transform_indices = @transform_7, window_bounds = array<i64: 8, 128>}]} {
    %c0 = arith.constant 0 : index
    %c0_0 = arith.constant 0 : index
    %0 = vector.load %arg1[%c0, %c0_0] : memref<8x16xf32, #tpu.memory_space<vmem>>, vector<8x16xf32>
    %1 = arith.truncf %0 : vector<8x16xf32> to vector<8x16xbf16>
    %c0_1 = arith.constant 0 : index
    %c0_2 = arith.constant 0 : index
    %2 = vector.load %arg2[%c0_1, %c0_2] : memref<16x128xbf16, #tpu.memory_space<vmem>>, vector<16x128xbf16>
    %cst = arith.constant dense<0.000000e+00> : vector<8x128xf32>
    %3 = tpu.matmul %1, %2, %cst {dimension_numbers = #tpu.dot_dimension_numbers<[1], [0], [0], [1], [0, 0, 1, 1], [], []>} : vector<8x16xbf16>, vector<16x128xbf16>, vector<8x128xf32> -> vector<8x128xf32>
    %c0_3 = arith.constant 0 : index
    %c0_4 = arith.constant 0 : index
    %4 = vector.load %arg3[%c0_3, %c0_4] : memref<1x128xf32, #tpu.memory_space<vmem>>, vector<1x128xf32>
    %5 = vector.broadcast %4 : vector<1x128xf32> to vector<8x128xf32>
    %6 = arith.addf %3, %5 : vector<8x128xf32>
    %cst_5 = arith.constant 0.000000e+00 : f32
    %7 = vector.broadcast %cst_5 : f32 to vector<8x128xf32>
    %8 = arith.maximumf %6, %7 : vector<8x128xf32>
    %9 = arith.truncf %8 : vector<8x128xf32> to vector<8x128xbf16>
    %c0_6 = arith.constant 0 : index
    %c0_7 = arith.constant 0 : index
    %10 = vector.load %arg4[%c0_6, %c0_7] : memref<128x128xbf16, #tpu.memory_space<vmem>>, vector<128x128xbf16>
    %cst_8 = arith.constant dense<0.000000e+00> : vector<8x128xf32>
    %11 = tpu.matmul %9, %10, %cst_8 {dimension_numbers = #tpu.dot_dimension_numbers<[1], [0], [0], [1], [0, 0, 1, 1], [], []>} : vector<8x128xbf16>, vector<128x128xbf16>, vector<8x128xf32> -> vector<8x128xf32>
    %c0_9 = arith.constant 0 : index
    %c0_10 = arith.constant 0 : index
    %12 = vector.load %arg5[%c0_9, %c0_10] : memref<1x128xf32, #tpu.memory_space<vmem>>, vector<1x128xf32>
    %13 = vector.broadcast %12 : vector<1x128xf32> to vector<8x128xf32>
    %14 = arith.addf %11, %13 : vector<8x128xf32>
    %cst_11 = arith.constant 0.000000e+00 : f32
    %15 = vector.broadcast %cst_11 : f32 to vector<8x128xf32>
    %16 = arith.maximumf %14, %15 : vector<8x128xf32>
    %17 = arith.truncf %16 : vector<8x128xf32> to vector<8x128xbf16>
    %c0_12 = arith.constant 0 : index
    %c0_13 = arith.constant 0 : index
    %18 = vector.load %arg6[%c0_12, %c0_13] : memref<128x128xbf16, #tpu.memory_space<vmem>>, vector<128x128xbf16>
    %cst_14 = arith.constant dense<0.000000e+00> : vector<8x128xf32>
    %19 = tpu.matmul %17, %18, %cst_14 {dimension_numbers = #tpu.dot_dimension_numbers<[1], [0], [0], [1], [0, 0, 1, 1], [], []>} : vector<8x128xbf16>, vector<128x128xbf16>, vector<8x128xf32> -> vector<8x128xf32>
    %c0_15 = arith.constant 0 : index
    %c0_16 = arith.constant 0 : index
    %20 = vector.load %arg7[%c0_15, %c0_16] : memref<1x128xf32, #tpu.memory_space<vmem>>, vector<1x128xf32>
    %21 = vector.broadcast %20 : vector<1x128xf32> to vector<8x128xf32>
    %22 = arith.addf %19, %21 : vector<8x128xf32>
    %23 = tpu.iota {dimensions = array<i32: 1>} : vector<8x128xi32>
    %c4_i32 = arith.constant 4 : i32
    %24 = vector.broadcast %c4_i32 : i32 to vector<8x128xi32>
    %25 = arith.cmpi slt, %23, %24 : vector<8x128xi32>
    %cst_17 = arith.constant 0xFF800000 : f32
    %26 = vector.broadcast %cst_17 : f32 to vector<8x128xf32>
    %27 = arith.select %25, %22, %26 : vector<8x128xi1>, vector<8x128xf32>
    %cst_18 = arith.constant dense<0xFF800000> : vector<8xf32>
    %28 = vector.multi_reduction <maximumf>, %27, %cst_18 [1] : vector<8x128xf32> to vector<8xf32>
    %29 = vector.shape_cast %28 : vector<8xf32> to vector<8x1xf32>
    %30 = vector.broadcast %29 : vector<8x1xf32> to vector<8x128xf32>
    %31 = arith.subf %22, %30 : vector<8x128xf32>
    %cst_19 = arith.constant 0.000000e+00 : f32
    %32 = vector.broadcast %cst_19 : f32 to vector<8x128xf32>
    %33 = arith.minimumf %31, %32 : vector<8x128xf32>
    %34 = math.exp %33 : vector<8x128xf32>
    %cst_20 = arith.constant 0.000000e+00 : f32
    %35 = vector.broadcast %cst_20 : f32 to vector<8x128xf32>
    %36 = arith.select %25, %34, %35 : vector<8x128xi1>, vector<8x128xf32>
    %cst_21 = arith.constant dense<0.000000e+00> : vector<8xf32>
    %37 = vector.multi_reduction <add>, %36, %cst_21 [1] : vector<8x128xf32> to vector<8xf32>
    %38 = vector.shape_cast %37 : vector<8xf32> to vector<8x1xf32>
    %39 = tpu.reciprocal %38 : vector<8x1xf32> -> vector<8x1xf32>
    %40 = vector.broadcast %39 : vector<8x1xf32> to vector<8x128xf32>
    %41 = arith.mulf %36, %40 : vector<8x128xf32>
    %c4_i32_22 = arith.constant 4 : i32
    %42 = vector.broadcast %c4_i32_22 : i32 to vector<8x128xi32>
    %43 = arith.cmpi eq, %23, %42 : vector<8x128xi32>
    %cst_23 = arith.constant 0.000000e+00 : f32
    %44 = vector.broadcast %cst_23 : f32 to vector<8x128xf32>
    %45 = arith.select %43, %22, %44 : vector<8x128xi1>, vector<8x128xf32>
    %46 = arith.select %25, %41, %45 : vector<8x128xi1>, vector<8x128xf32>
    %c0_24 = arith.constant 0 : index
    %c0_25 = arith.constant 0 : index
    %47 = vector.load %arg8[%c0_24, %c0_25] : memref<8x128xf32, #tpu.memory_space<vmem>>, vector<8x128xf32>
    tpu.vector_store %arg8[%c0_24, %c0_25], %46 {strides = array<i32>} : memref<8x128xf32, #tpu.memory_space<vmem>>, vector<8x128xf32>,
    return
  }
  func.func @transform_0(%arg0: i32) -> (i32, i32) {
    %c0_i32 = arith.constant 0 : i32
    %c0_i32_0 = arith.constant 0 : i32
    return %arg0, %c0_i32 : i32, i32
  }
  func.func @transform_1(%arg0: i32) -> (i32, i32) {
    %c0_i32 = arith.constant 0 : i32
    %c0_i32_0 = arith.constant 0 : i32
    %c0_i32_1 = arith.constant 0 : i32
    return %c0_i32, %c0_i32_0 : i32, i32
  }
  func.func @transform_2(%arg0: i32) -> (i32, i32) {
    %c0_i32 = arith.constant 0 : i32
    %c0_i32_0 = arith.constant 0 : i32
    %c0_i32_1 = arith.constant 0 : i32
    return %c0_i32, %c0_i32_0 : i32, i32
  }
  func.func @transform_3(%arg0: i32) -> (i32, i32) {
    %c0_i32 = arith.constant 0 : i32
    %c0_i32_0 = arith.constant 0 : i32
    %c0_i32_1 = arith.constant 0 : i32
    return %c0_i32, %c0_i32_0 : i32, i32
  }
  func.func @transform_4(%arg0: i32) -> (i32, i32) {
    %c0_i32 = arith.constant 0 : i32
    %c0_i32_0 = arith.constant 0 : i32
    %c0_i32_1 = arith.constant 0 : i32
    return %c0_i32, %c0_i32_0 : i32, i32
  }
  func.func @transform_5(%arg0: i32) -> (i32, i32) {
    %c0_i32 = arith.constant 0 : i32
    %c0_i32_0 = arith.constant 0 : i32
    %c0_i32_1 = arith.constant 0 : i32
    return %c0_i32, %c0_i32_0 : i32, i32
  }
  func.func @transform_6(%arg0: i32) -> (i32, i32) {
    %c0_i32 = arith.constant 0 : i32
    %c0_i32_0 = arith.constant 0 : i32
    %c0_i32_1 = arith.constant 0 : i32
    return %c0_i32, %c0_i32_0 : i32, i32
  }
  func.func @transform_7(%arg0: i32) -> (i32, i32) {
    %c0_i32 = arith.constant 0 : i32
    %c0_i32_0 = arith.constant 0 : i32
    return %arg0, %c0_i32 : i32, i32
  }
}

</mosaic_0001>

<bundles_post_ra>
// kernel: tpu_custom_call.1
= control target key start
LH: loop header
LB: loop body
LE: loop exit
PB: predicated region body
PF: predicated region fallthrough
CT: control target
= control target key end

     0   :  { %12 = vsyncpa [#allocation3], 0  ;;  %s789_s0 = inlined_call_operand.hbm [shape: f32[8,16], index: 0, kind: input, shape index: {}]   ;;  %s790_s1 = inlined_call_operand.hbm [shape: bf16[16,128], index: 1, kind: input, shape index: {}]   ;;  %s791_s2 = inlined_call_operand.vmem [shape: f32[1,128], index: 2, kind: input, shape index: {}]   ;;  %s792_s3 = inlined_call_operand.hbm [shape: bf16[128,128], index: 3, kind: input, shape index: {}]   ;;  %s793_s4 = inlined_call_operand.vmem [shape: f32[1,128], index: 4, kind: input, shape index: {}]   ;;  %s794_s5 = inlined_call_operand.hbm [shape: bf16[128,128], index: 5, kind: input, shape index: {}]   ;;  %s795_s6 = inlined_call_operand.vmem [shape: f32[1,128], index: 6, kind: input, shape index: {}]   ;;  %s796_s7 = inlined_call_operand.hbm [shape: f32[8,128], index: 7, kind: output, shape index: {}]  }
   0x1   :  { %13 = vsyncpa [#allocation6], 0 }
   0x2   :  { %14 = vsyncpa [#allocation9], 0 }
   0x3   :  { %15 = vsyncpa [#allocation4], 0  ;;  %s639_s24 = smov [#allocation5]   ;;  %s521_s28 = scalar_lea.hbm %s790_s1, 128 }
   0x4   :  { %s31_s25 = sshll.u32 %s639_s24, 4  ;;  %p522_p0 = scmp.ne.s32.totalorder %s790_s1, %s521_s28  ;;  %s32_s25 = int_to_ptr.vmem [resolvable:$true] %s31_s25 }
   0x5   :  { %p525_p1 = scmp.lt.u32.totalorder %s521_s28, %s790_s1 }
   0x7   :  { %p527_p2 = pnand %p525_p1, %p522_p0 }
   0x9   :  { %530 = shalt.err (!%p527_p2)
}
   0xa   :  { %s531_s10 = scalar_lea.vmem %s32_s25, 128  ;;  %p536_p4 = scmp.lt.s32.totalorder %s32_s25, %s32_s25 }
   0xb   :  { %p532_p3 = scmp.ne.s32.totalorder %s32_s25, %s531_s10  ;;  %p537_p5 = scmp.lt.s32.totalorder %s531_s10, %s531_s10 }
   0xd   :  { %p538_p6 = por %p537_p5, %p536_p4 }
   0xf   :  { %p539_p7 = pnand %p538_p6, %p532_p3 }
  0x11   :  { %542 = shalt.err (!%p539_p7)
}
  0x12   :  { %s640_s11 = smov 64   ;;  %s641_s12 = smov 4  }
  0x13   :  { %37 = dma.hbm_to_vmem [thread:$0]  %s790_s1, 128, %s32_s25, [#allocation6], %s640_s11, %s640_s11, %s641_s12  }
  0x14   :  { %s642_s15 = smov [#allocation2]   ;;  %s643_s17 = smov [#allocation7]  }
  0x15   :  { %s22_s16 = sshll.u32 %s642_s15, 4  ;;  %s45_s18 = sshll.u32 %s643_s17, 4  ;;  %s23_s16 = int_to_ptr.vmem [resolvable:$true] %s22_s16  ;;  %s46_s18 = int_to_ptr.vmem [resolvable:$true] %s45_s18 }
  0x16   :  { %s543_s21 = scalar_lea.hbm %s789_s0, 128 }
  0x17   :  { %p544_p8 = scmp.ne.s32.totalorder %s789_s0, %s543_s21  ;;  %p547_p9 = scmp.lt.u32.totalorder %s543_s21, %s789_s0 }
  0x19   :  { %p549_p10 = pnand %p547_p9, %p544_p8 }
  0x1b   :  { %552 = shalt.err (!%p549_p10)
}
  0x1c   :  { %s553_s1 = scalar_lea.vmem %s23_s16, 128  ;;  %p558_p12 = scmp.lt.s32.totalorder %s23_s16, %s23_s16 }
  0x1d   :  { %p554_p11 = scmp.ne.s32.totalorder %s23_s16, %s553_s1  ;;  %p559_p13 = scmp.lt.s32.totalorder %s553_s1, %s553_s1 }
  0x1f   :  { %p560_p0 = por %p559_p13, %p558_p12 }
  0x21   :  { %p561_p1 = pnand %p560_p0, %p554_p11 }
  0x23   :  { %564 = shalt.err (!%p561_p1)
}
  0x24   :  { %25 = dma.hbm_to_vmem [thread:$0]  %s789_s0, 128, %s23_s16, [#allocation3]  }
  0x25   :  { %s565_s30 = scalar_lea.hbm %s792_s3, 1024 }
  0x26   :  { %p566_p2 = scmp.ne.s32.totalorder %s792_s3, %s565_s30  ;;  %p569_p3 = scmp.lt.u32.totalorder %s565_s30, %s792_s3 }
  0x28   :  { %p571_p4 = pnand %p569_p3, %p566_p2 }
  0x2a   :  { %574 = shalt.err (!%p571_p4)
}
  0x2b   :  { %s575_s14 = scalar_lea.vmem %s46_s18, 1024  ;;  %p580_p6 = scmp.lt.s32.totalorder %s46_s18, %s46_s18 }
  0x2c   :  { %p576_p5 = scmp.ne.s32.totalorder %s46_s18, %s575_s14  ;;  %p581_p7 = scmp.lt.s32.totalorder %s575_s14, %s575_s14 }
  0x2e   :  { %p582_p8 = por %p581_p7, %p580_p6 }
  0x30   :  { %p583_p9 = pnand %p582_p8, %p576_p5 }
  0x32   :  { %586 = shalt.err (!%p583_p9)
}
  0x33   :  { %51 = dma.hbm_to_vmem [thread:$0]  %s792_s3, 1024, %s46_s18, [#allocation6], %s640_s11, %s640_s11, %s641_s12  }
  0x34   :  { %s644_s16 = smov [#allocation8]   ;;  %s587_s21 = scalar_lea.hbm %s794_s5, 1024 }
  0x35   :  { %s59_s17 = sshll.u32 %s644_s16, 4  ;;  %p588_p10 = scmp.ne.s32.totalorder %s794_s5, %s587_s21  ;;  %s60_s17 = int_to_ptr.vmem [resolvable:$true] %s59_s17 }
  0x36   :  { %p591_p11 = scmp.lt.u32.totalorder %s587_s21, %s794_s5 }
  0x38   :  { %p593_p12 = pnand %p591_p11, %p588_p10 }
  0x3a   :  { %596 = shalt.err (!%p593_p12)
}
  0x3b   :  { %s597_s1 = scalar_lea.vmem %s60_s17, 1024  ;;  %p602_p0 = scmp.lt.s32.totalorder %s60_s17, %s60_s17 }
  0x3c   :  { %p598_p13 = scmp.ne.s32.totalorder %s60_s17, %s597_s1  ;;  %p603_p1 = scmp.lt.s32.totalorder %s597_s1, %s597_s1 }
  0x3e   :  { %p604_p2 = por %p603_p1, %p602_p0 }
  0x40   :  { %p605_p3 = pnand %p604_p2, %p598_p13 }
  0x42   :  { %608 = shalt.err (!%p605_p3)
}
  0x43   :  { %65 = dma.hbm_to_vmem [thread:$0]  %s794_s5, 1024, %s60_s17, [#allocation9], %s640_s11, %s640_s11, %s641_s12  }
  0x44   :  { %631 = dma.done.wait [#allocation3], 128  }
  0x45   :  { %632 = vsyncadd [#allocation3], 4294967168 }
  0x46   :  { %633 = dma.done.wait [#allocation6], 1152  }
  0x47   :  { %634 = vsyncadd [#allocation6], 4294966144 }
  0x48   :  { %635 = dma.done.wait [#allocation9], 1024  }
  0x49   :  { %636 = vsyncadd [#allocation9], 4294966272  ;;  %v645_v0 = vmov 0.0   ;;  %vm646_vm0 = vmmov 0   ;;  %v500_v1 = vld [vmem:[#allocation5] sm:$0xff]   ;;  %v81_v2 = vld [vmem:[#allocation2] sm:$0xff]  ;;  %v368_v36 = vlaneseq }
  0x4a   :  { %445 = vmatprep.subr.bf16.mxu0 %v645_v0  ;;  %447 = vmatprep.mubr.msk.bf16.mxu0 %vm646_vm0, %v645_v0  ;;  %v82_v3 = vpack.c.bf16 %v81_v2, %v81_v2  ;;  %vm98_vm1 = vcmask 130048   ;;  %v501_v4 = vld [vmem:[#allocation7] sm:$0xff]   ;;  %v502_v5 = vld [vmem:[#allocation7 + $0x8] sm:$0xff]   ;;  %v503_v6 = vld [vmem:[#allocation7 + $0x10] sm:$0xff]  }
  0x4b   :  { %451 = vmatprep.subr.bf16.mxu1 %v645_v0  ;;  %467 = vmatprep.mubr.msk.bf16.mxu1 %vm646_vm0, %v645_v0  ;;  %v504_v7 = vld [vmem:[#allocation7 + $0x18] sm:$0xff]   ;;  %v505_v8 = vld [vmem:[#allocation7 + $0x20] sm:$0xff]   ;;  %v506_v9 = vld [vmem:[#allocation7 + $0x28] sm:$0xff]   ;;  %v369_v37 = vand.u32 127, %v368_v36 }
  0x4c   :  { %446 = vmatpush3.bf16.msra.mxu0 %v500_v1  ;;  %452 = vmatpush3.bf16.msra.mxu1 %v501_v4  ;;  %v507_v10 = vld [vmem:[#allocation7 + $0x30] sm:$0xff]   ;;  %v508_v11 = vld [vmem:[#allocation7 + $0x38] sm:$0xff]   ;;  %v509_v12 = vld [vmem:[#allocation8] sm:$0xff]  }
  0x4d   :  { %471 = vmatprep.subr.bf16.mxu0 %v645_v0  ;;  %453 = vmatprep.subr.bf16.mxu1 %v645_v0  ;;  %v510_v13 = vld [vmem:[#allocation8 + $0x8] sm:$0xff]   ;;  %v511_v14 = vld [vmem:[#allocation8 + $0x10] sm:$0xff]   ;;  %v512_v15 = vld [vmem:[#allocation8 + $0x18] sm:$0xff]   ;;  %vm370_vm2 = vcmp.lt.s32.totalorder %v369_v37, 4  ;;  %vm383_vm3 = vcmp.eq.s32.totalorder %v369_v37, 4 }
  0x4e   :  { %v513_v16 = vld [vmem:[#allocation8 + $0x20] sm:$0xff]   ;;  %v514_v17 = vld [vmem:[#allocation8 + $0x28] sm:$0xff]   ;;  %v404_v18 = vld [vmem:[%s791_s2] ss:$0 sm:$0xff] }
  0x4f   :  { %448 = vmatmul.mubr.msk.bf16.vlgmr.msra.gmra.mrb[0].mxu0 %vm98_vm1, %v82_v3  ;;  %v515_v26 = vld [vmem:[#allocation8 + $0x30] sm:$0xff]   ;;  %v516_v27 = vld [vmem:[#allocation8 + $0x38] sm:$0xff]  }
  0x50   :  { %487 = vmatprep.mubr.msk.bf16.mxu0 %vm646_vm0, %v645_v0  ;;  %454 = vmatpush3.bf16.msra.mxu1 %v502_v5  ;;  %v407_v28 = vld [vmem:[%s793_s4] ss:$0 sm:$0xff]  ;;  %s647_s4 = smov [#allocation10]  }
  0x51   :  { %455 = vmatprep.subr.bf16.mxu1 %v645_v0  ;;  %472 = vmatpush3.bf16.msra.mxu0 %v509_v12  ;;  %v416_v38 = vld [vmem:[%s795_s6] ss:$0 sm:$0xff]  ;;  %s393_s6 = sshll.u32 %s647_s4, 4  ;;  %s394_s6 = int_to_ptr.vmem [resolvable:$true] %s393_s6 }
  0x52   :  { %473 = vmatprep.subr.bf16.mxu0 %v645_v0  ;;  %s609_s28 = scalar_lea.vmem %s394_s6, 128  ;;  %p614_p5 = scmp.lt.s32.totalorder %s394_s6, %s394_s6 }
  0x53   :  { %p610_p4 = scmp.ne.s32.totalorder %s394_s6, %s609_s28  ;;  %p615_p6 = scmp.lt.s32.totalorder %s609_s28, %s609_s28 }
  0x54   :  { %456 = vmatpush3.bf16.msra.mxu1 %v503_v6 }
  0x55   :  { %457 = vmatprep.subr.bf16.mxu1 %v645_v0  ;;  %474 = vmatpush3.bf16.msra.mxu0 %v510_v13  ;;  %p616_p7 = por %p615_p6, %p614_p5 }
  0x56   :  { %475 = vmatprep.subr.bf16.mxu0 %v645_v0 }
  0x57   :  { %p617_p8 = pnand %p616_p7, %p610_p4 }
  0x58   :  { %458 = vmatpush3.bf16.msra.mxu1 %v504_v7 }
  0x59   :  { %459 = vmatprep.subr.bf16.mxu1 %v645_v0  ;;  %476 = vmatpush3.bf16.msra.mxu0 %v511_v14 }
  0x5a   :  { %477 = vmatprep.subr.bf16.mxu0 %v645_v0 }
  0x5c   :  { %460 = vmatpush3.bf16.msra.mxu1 %v505_v8 }
  0x5d   :  { %461 = vmatprep.subr.bf16.mxu1 %v645_v0  ;;  %478 = vmatpush3.bf16.msra.mxu0 %v512_v15 }
  0x5e   :  { %479 = vmatprep.subr.bf16.mxu0 %v645_v0 }
  0x60   :  { %462 = vmatpush3.bf16.msra.mxu1 %v506_v9 }
  0x61   :  { %463 = vmatprep.subr.bf16.mxu1 %v645_v0  ;;  %480 = vmatpush3.bf16.msra.mxu0 %v513_v16 }
  0x62   :  { %481 = vmatprep.subr.bf16.mxu0 %v645_v0 }
  0x64   :  { %464 = vmatpush3.bf16.msra.mxu1 %v507_v10 }
  0x65   :  { %465 = vmatprep.subr.bf16.mxu1 %v645_v0  ;;  %482 = vmatpush3.bf16.msra.mxu0 %v514_v17 }
  0x66   :  { %483 = vmatprep.subr.bf16.mxu0 %v645_v0 }
  0x68   :  { %466 = vmatpush3.bf16.msra.mxu1 %v508_v11 }
  0x69   :  { %484 = vmatpush3.bf16.msra.mxu0 %v515_v26 }
  0x6a   :  { %485 = vmatprep.subr.bf16.mxu0 %v645_v0 }
  0x6d   :  { %486 = vmatpush3.bf16.msra.mxu0 %v516_v27 }
 0x122   :  { %v136_v19 = vpop.f32.mrb[0].mxu0 }
 0x123   :  { %v137_v20 = vadd.f32 %v404_v18, %v136_v19  ;;  %v449_v21 = vpop.f32.mrb[1].mxu0 }
 0x124   :  { %v139_v22 = vpop.f32.mrb[2].mxu0 }
 0x125   :  { %v142_v23 = vmax.f32 %v137_v20, 0.0  ;;  %v450_v24 = vpop.f32.mrb[3].mxu0 }
 0x127   :  { %v143_v25 = vpack.c.bf16 %v142_v23, %v142_v23 }
 0x129   :  { %468 = vmatmul.mubr.bf16.vlgmr.msra.gmra.mrb[0].mxu1 %v143_v25 }
 0x1fc   :  { %v249_v29 = vpop.f32.mrb[0].mxu1 }
 0x1fd   :  { %v250_v30 = vadd.f32 %v407_v28, %v249_v29  ;;  %v469_v31 = vpop.f32.mrb[1].mxu1 }
 0x1fe   :  { %v252_v32 = vpop.f32.mrb[2].mxu1 }
 0x1ff   :  { %v255_v33 = vmax.f32 %v250_v30, 0.0  ;;  %v470_v34 = vpop.f32.mrb[3].mxu1 }
 0x201   :  { %v256_v35 = vpack.c.bf16 %v255_v33, %v255_v33 }
 0x203   :  { %488 = vmatmul.mubr.bf16.vlgmr.msra.gmra.mrb[4].mxu0 %v256_v35 }
 0x2d6   :  { %v362_v39 = vpop.f32.mrb[4].mxu0 }
 0x2d7   :  { %v363_v40 = vadd.f32 %v416_v38, %v362_v39  ;;  %v489_v41 = vpop.f32.mrb[5].mxu0 }
 0x2d8   :  { %v365_v42 = vpop.f32.mrb[6].mxu0 }
 0x2d9   :  { %v490_v43 = vpop.f32.mrb[7].mxu0  ;;  %v371_v44 = vsel %vm370_vm2, %v363_v40, -inf  ;;  %v384_v54 = vsel %vm383_vm3, %v363_v40, 0.0 }
 0x2da   :  { %372 = vmax.xlane.f32.xlu0 %v371_v44 }
 0x367   :  { %v373_v45 = vpop.xlane.xlu0 %372 }
 0x368   :  { %v374_v46 = vsub.f32 %v363_v40, %v373_v45 }
 0x36a   :  { %v375_v47 = vmin.f32 %v374_v46, 0.0 }
 0x36c   :  { %v376_v48 = vmul.f32 1.442695, %v375_v47 }
 0x36e   :  { %517 = vpow2.f32 %v376_v48 }
 0x378   :  { %v518_v49 = vpop.eup %517 }
 0x379   :  { %v378_v50 = vsel %vm370_vm2, %v518_v49, 0.0 }
 0x37a   :  { %379 = vadd.xlane.f32.xlu0 %v378_v50 }
 0x407   :  { %v380_v51 = vpop.xlane.xlu0 %379 }
 0x408   :  { %519 = vrcp.f32 %v380_v51 }
 0x412   :  { %v520_v52 = vpop.eup %519 }
 0x413   :  { %v382_v53 = vmul.f32 %v520_v52, %v378_v50 }
 0x415   :  { %v385_v55 = vsel %vm370_vm2, %v382_v53, %v384_v54 }
 0x416   :  { %386 = vst [vmem:[#allocation10] sm:$0xff] %v385_v55 }
 0x417   :  { %620 = shalt.err (!%p617_p8)
}
 0x418   :  { %s621_s8 = scalar_lea.hbm %s796_s7, 128 }
 0x419   :  { %p622_p9 = scmp.ne.s32.totalorder %s796_s7, %s621_s8  ;;  %p625_p10 = scmp.lt.u32.totalorder %s621_s8, %s796_s7 }
 0x41b   :  { %p627_p11 = pnand %p625_p10, %p622_p9 }
 0x41d   :  { %630 = shalt.err (!%p627_p11)
}
 0x41e   :  { %396 = dma.vmem_to_hbm [thread:$0]  %s394_s6, 128, %s796_s7, [#allocation4]  }
 0x41f   :  { %637 = dma.done.wait [#allocation4], 128  }
 0x420   :  { %638 = vsyncadd [#allocation4], 4294967168 }
 0x421   :  { %400 = vsyncpa [#allocation3], 1 }
 0x422   :  { %401 = vsyncpa [#allocation6], 1 }
 0x423   :  { %402 = vsyncpa [#allocation9], 1 }
 0x424   :  { %403 = vsyncpa [#allocation4], 1 }

</bundles_post_ra>
